<compile_context>
chip_gen: v5e
topology: v5e:2x2
jax: 0.10.0
libtpu: 0.0.40
codegen_flags: <defaults>
</compile_context>

<pallas_src>
import functools
import math

import jax
import jax.numpy as jnp
from jax.experimental import pallas as pl
from jax.experimental.pallas import tpu as pltpu

LN_EPS = 1e-12  # espnet LayerNorm uses eps=1e-12


def _round_up(n, m):
    return ((n + m - 1) // m) * m


# ----------------------------------------------------------------------------
# Tiled linear (+ReLU) for the conv-subsampling im2col matmuls
# ----------------------------------------------------------------------------
def _linear_kernel(x_ref, w_ref, b_ref, o_ref, *, relu):
    y = jnp.dot(x_ref[...].astype(jnp.bfloat16), w_ref[...],
                preferred_element_type=jnp.float32)
    y = y + b_ref[...]
    if relu:
        y = jnp.maximum(y, 0.0)
    o_ref[...] = y


def pallas_linear(x, w_bf16, b, relu=False, tm=512):
    """x:(M,K) f32 @ w:(K,N) bf16 + b:(N,), tiled over M."""
    M, K = x.shape
    N = w_bf16.shape[1]
    TM = min(tm, _round_up(M, 8))
    Mp = _round_up(M, TM)
    xp = jnp.pad(x, ((0, Mp - M), (0, 0))) if Mp != M else x
    out = pl.pallas_call(
        functools.partial(_linear_kernel, relu=relu),
        grid=(Mp // TM,),
        in_specs=[pl.BlockSpec((TM, K), lambda i: (i, 0)),
                  pl.BlockSpec((K, N), lambda i: (0, 0)),
                  pl.BlockSpec((1, N), lambda i: (0, 0))],
        out_specs=pl.BlockSpec((TM, N), lambda i: (i, 0)),
        out_shape=jax.ShapeDtypeStruct((Mp, N), jnp.float32),
        compiler_params=pltpu.CompilerParams(dimension_semantics=("parallel",)),
    )(xp, w_bf16, b.reshape(1, N))
    return out[:M] if Mp != M else out


# ----------------------------------------------------------------------------
# Subsampling output linear fused with positional encoding:
#   o = (x @ W + b) * sqrt(D) + pe
# ----------------------------------------------------------------------------
def _out_posenc_kernel(x_ref, pe_ref, w_ref, b_ref, o_ref, *, scale):
    y = jnp.dot(x_ref[0].astype(jnp.bfloat16), w_ref[...],
                preferred_element_type=jnp.float32) + b_ref[...]
    o_ref[0] = y * scale + pe_ref[0]


def pallas_out_posenc(x, pe, w_bf16, b, adim):
    B, T, K = x.shape
    D = w_bf16.shape[1]
    return pl.pallas_call(
        functools.partial(_out_posenc_kernel, scale=math.sqrt(adim)),
        grid=(B,),
        in_specs=[pl.BlockSpec((1, T, K), lambda i: (i, 0, 0)),
                  pl.BlockSpec((1, T, D), lambda i: (0, 0, 0)),
                  pl.BlockSpec((K, D), lambda i: (0, 0)),
                  pl.BlockSpec((1, D), lambda i: (0, 0))],
        out_specs=pl.BlockSpec((1, T, D), lambda i: (i, 0, 0)),
        out_shape=jax.ShapeDtypeStruct((B, T, D), jnp.float32),
        compiler_params=pltpu.CompilerParams(dimension_semantics=("parallel",)),
    )(x, pe, w_bf16, b.reshape(1, D))


# ----------------------------------------------------------------------------
# Whole transformer stack in one pallas_call: grid = (batch, layer).
# The activation lives in a VMEM scratch across the layer axis; the final
# after_norm is applied before the single output write on the last layer.
# ----------------------------------------------------------------------------
def _encoder_stack_kernel(x_ref, mask_ref,
                          ln1g, ln1b, wqkv, bqkv, wo, bo,
                          ln2g, ln2b, w1, b1, w2, b2,
                          afg, afb,
                          o_ref, y_scr, *, n_heads, eps):
    l = pl.program_id(1)

    @pl.when(l == 0)
    def _():
        y_scr[...] = x_ref[0]

    T, D = y_scr.shape
    H = n_heads
    dk = D // H
    scale = 1.0 / math.sqrt(dk)
    neg = jnp.float32(jnp.finfo(jnp.float32).min)
    bf16 = jnp.bfloat16

    # key-mask hoisted once (1.0 = keep); broadcasts over (H, T, T)
    keep = mask_ref[0] > 0.0                                   # (1, T) bool

    def ln(z, g, b):
        m = jnp.mean(z, axis=-1, keepdims=True)
        v = jnp.mean((z - m) ** 2, axis=-1, keepdims=True)
        return (z - m) * jax.lax.rsqrt(v + eps) * g[0] + b[0]

    y = y_scr[...]                                             # (T, D) f32

    # ---- self-attention sublayer (pre-norm, residual) ----
    xn = ln(y, ln1g, ln1b).astype(bf16)
    qkv = jnp.dot(xn, wqkv[0], preferred_element_type=jnp.float32) + bqkv[0, 0]
    q = qkv[:, 0:D] * scale
    k = qkv[:, D:2 * D]
    v = qkv[:, 2 * D:3 * D]

    # head-batched tensors (H, T, dk); one batched contraction per einsum
    qh = jnp.stack([q[:, h * dk:(h + 1) * dk] for h in range(H)], 0).astype(bf16)
    kh = jnp.stack([k[:, h * dk:(h + 1) * dk] for h in range(H)], 0).astype(bf16)
    vh = jnp.stack([v[:, h * dk:(h + 1) * dk] for h in range(H)], 0).astype(bf16)

    s = jnp.einsum('htd,hsd->hts', qh, kh,
                   preferred_element_type=jnp.float32)          # (H, T, T) f32
    s = jnp.where(keep, s, neg)
    mmax = jnp.max(s, axis=-1, keepdims=True)
    e = jnp.exp(s - mmax)
    p = e * pl.reciprocal(jnp.sum(e, axis=-1, keepdims=True), approx=True)
    p = jnp.where(keep, p, 0.0)

    ctx = jnp.einsum('hts,hsd->htd', p.astype(bf16), vh,
                     preferred_element_type=jnp.float32)        # (H, T, dk)
    ctx = jnp.concatenate([ctx[h] for h in range(H)], axis=-1)  # (T, D)
    att = jnp.dot(ctx.astype(bf16), wo[0],
                  preferred_element_type=jnp.float32) + bo[0, 0]
    y = y + att

    # ---- feed-forward sublayer (pre-norm, residual) ----
    xn = ln(y, ln2g, ln2b).astype(bf16)
    h1 = jnp.maximum(
        jnp.dot(xn, w1[0], preferred_element_type=jnp.float32) + b1[0, 0], 0.0)
    ff = jnp.dot(h1.astype(bf16), w2[0],
                 preferred_element_type=jnp.float32) + b2[0, 0]
    y = y + ff

    y_scr[...] = y

    @pl.when(l == pl.num_programs(1) - 1)
    def _():
        o_ref[0] = ln(y, afg, afb)       # fused after_norm (normalize_before=True)


def pallas_encoder_stack(x, mask_f32, sp, n_heads):
    """x:(B,T,D), mask_f32:(B,1,T); per-layer weights stacked along axis 0."""
    B, T, D = x.shape
    L = sp["wqkv"].shape[0]
    D3 = sp["wqkv"].shape[2]
    U = sp["w1"].shape[2]

    def lay(shape):
        return pl.BlockSpec((1,) + shape, lambda b, l: (l,) + (0,) * len(shape))

    def const(shape):
        return pl.BlockSpec(shape, lambda b, l: (0,) * len(shape))

    in_specs = [
        pl.BlockSpec((1, T, D), lambda b, l: (b, 0, 0)),    # x
        pl.BlockSpec((1, 1, T), lambda b, l: (b, 0, 0)),    # mask
        lay((1, D)), lay((1, D)),                           # ln1 gamma/beta
        lay((D, D3)), lay((1, D3)),                         # wqkv, bqkv
        lay((D, D)), lay((1, D)),                           # wo, bo
        lay((1, D)), lay((1, D)),                           # ln2 gamma/beta
        lay((D, U)), lay((1, U)),                           # ffn w1, b1
        lay((U, D)), lay((1, D)),                           # ffn w2, b2
        const((1, D)), const((1, D)),                       # after_norm gamma/beta
    ]
    return pl.pallas_call(
        functools.partial(_encoder_stack_kernel, n_heads=n_heads, eps=LN_EPS),
        grid=(B, L),
        in_specs=in_specs,
        out_specs=pl.BlockSpec((1, T, D), lambda b, l: (b, 0, 0)),
        out_shape=jax.ShapeDtypeStruct((B, T, D), jnp.float32),
        scratch_shapes=[pltpu.VMEM((T, D), jnp.float32)],
        compiler_params=pltpu.CompilerParams(
            dimension_semantics=("parallel", "arbitrary")),
    )(x, mask_f32,
      sp["ln1_g"], sp["ln1_b"], sp["wqkv"], sp["bqkv"], sp["wo"], sp["bo"],
      sp["ln2_g"], sp["ln2_b"], sp["w1"], sp["b1"], sp["w2"], sp["b2"],
      sp["after_g"], sp["after_b"])


# ----------------------------------------------------------------------------
# Glue (im2col, positional encoding table, parameter init / packing)
# ----------------------------------------------------------------------------
def im2col(x, k, stride):
    """x: (B, C, H, W) NCHW -> patches (B*Ho*Wo, C*k*k), flattened (C, kh, kw)."""
    # TODO(synk): for long utterances, gather patches via a BlockSpec index_map
    # instead of materializing the 9x-expanded patch matrix in HBM.
    B, C, H, W = x.shape
    Ho = (H - k) // stride + 1
    Wo = (W - k) // stride + 1
    cols = []
    for di in range(k):
        for dj in range(k):
            cols.append(x[:, :, di:di + stride * Ho:stride, dj:dj + stride * Wo:stride])
    p = jnp.stack(cols, axis=0).reshape(k, k, B, C, Ho, Wo)
    p = p.transpose(2, 4, 5, 3, 0, 1).reshape(B * Ho * Wo, C * k * k)
    return p, Ho, Wo


def sinusoid_pe(T, d):
    pos = jnp.arange(T, dtype=jnp.float32)[:, None]
    div = jnp.exp(jnp.arange(0, d, 2, dtype=jnp.float32) * -(math.log(10000.0) / d))
    pe = jnp.zeros((T, d), jnp.float32)
    pe = pe.at[:, 0::2].set(jnp.sin(pos * div))
    pe = pe.at[:, 1::2].set(jnp.cos(pos * div))
    return pe[None]  # (1, T, d)


def init_params(key, idim, adim, heads, units, num_blocks):
    f_sub = ((idim - 1) // 2 - 1) // 2
    cnt = [0]

    def nrm(shape, scale=0.1):
        cnt[0] += 1
        return scale * jax.random.normal(jax.random.fold_in(key, cnt[0]), shape,
                                         dtype=jnp.float32)

    params = {
        "conv1_w": nrm((1 * 3 * 3, adim)), "conv1_b": nrm((adim,)),
        "conv2_w": nrm((adim * 3 * 3, adim)), "conv2_b": nrm((adim,)),
        "out_w": nrm((adim * f_sub, adim)), "out_b": nrm((adim,)),
        "after_g": jnp.ones((adim,), jnp.float32),
        "after_b": jnp.zeros((adim,), jnp.float32),
        "layers": [],
    }
    for _ in range(num_blocks):
        params["layers"].append({
            "ln1_g": jnp.ones((adim,), jnp.float32), "ln1_b": jnp.zeros((adim,), jnp.float32),
            "wq": nrm((adim, adim)), "bq": nrm((adim,)),
            "wk": nrm((adim, adim)), "bk": nrm((adim,)),
            "wv": nrm((adim, adim)), "bv": nrm((adim,)),
            "wo": nrm((adim, adim)), "bo": nrm((adim,)),
            "ln2_g": jnp.ones((adim,), jnp.float32), "ln2_b": jnp.zeros((adim,), jnp.float32),
            "w1": nrm((adim, units)), "b1": nrm((units,)),
            "w2": nrm((units, adim)), "b2": nrm((adim,)),
        })
    return params


def pack_params(raw):
    """Stack per-layer weights along a leading layer axis, fuse q/k/v, cast weights bf16."""
    bf16 = jnp.bfloat16
    D = raw["layers"][0]["wq"].shape[0]

    def stk(name):
        return jnp.stack([lp[name] for lp in raw["layers"]], axis=0)

    sp = {
        "conv1_w": raw["conv1_w"].astype(bf16), "conv1_b": raw["conv1_b"],
        "conv2_w": raw["conv2_w"].astype(bf16), "conv2_b": raw["conv2_b"],
        "out_w": raw["out_w"].astype(bf16), "out_b": raw["out_b"],
        "after_g": raw["after_g"].reshape(1, D),
        "after_b": raw["after_b"].reshape(1, D),
        "ln1_g": stk("ln1_g")[:, None, :], "ln1_b": stk("ln1_b")[:, None, :],
        "ln2_g": stk("ln2_g")[:, None, :], "ln2_b": stk("ln2_b")[:, None, :],
        "wqkv": jnp.stack([jnp.concatenate([lp["wq"], lp["wk"], lp["wv"]], axis=1)
                           for lp in raw["layers"]], axis=0).astype(bf16),
        "bqkv": jnp.stack([jnp.concatenate([lp["bq"], lp["bk"], lp["bv"]], axis=0)
                           for lp in raw["layers"]], axis=0)[:, None, :],
        "wo": stk("wo").astype(bf16), "bo": stk("bo")[:, None, :],
        "w1": stk("w1").astype(bf16), "b1": stk("b1")[:, None, :],
        "w2": stk("w2").astype(bf16), "b2": stk("b2")[:, None, :],
    }
    return sp


# ----------------------------------------------------------------------------
# Encoder forward (matches Encoder.forward with default config, num_buff=0)
# ----------------------------------------------------------------------------
def encoder_forward(xs, masks, sp, adim, heads):
    B, T, F = xs.shape

    # ---- Conv2dSubsampling (NCHW, two 3x3 stride-2 convs + ReLU) ----
    x = xs[:, None, :, :]                                   # (B, 1, T, F)
    p1, H1, W1 = im2col(x, 3, 2)
    y1 = pallas_linear(p1, sp["conv1_w"], sp["conv1_b"], relu=True)
    x = y1.reshape(B, H1, W1, adim).transpose(0, 3, 1, 2)   # (B, adim, H1, W1)

    p2, H2, W2 = im2col(x, 3, 2)
    y2 = pallas_linear(p2, sp["conv2_w"], sp["conv2_b"], relu=True)
    x = y2.reshape(B, H2, W2, adim).transpose(0, 1, 3, 2)   # (B, T', C, F')
    x = x.reshape(B, H2, adim * W2)

    # out-linear fused with positional encoding (dropout = identity at inference)
    pe = sinusoid_pe(H2, adim)
    y = pallas_out_posenc(x, pe, sp["out_w"], sp["out_b"], adim)

    # subsampled mask: masks[:, :, :-2:2][:, :, :-2:2]
    masks_sub = None
    if masks is not None:
        masks_sub = masks[:, :, :-2:2][:, :, :-2:2]
    mask_f32 = (masks_sub.astype(jnp.float32) if masks_sub is not None
                else jnp.ones((B, 1, H2), jnp.float32))

    # ---- transformer encoder layers + after_norm, one pallas_call ----
    # (num_buff=0 -> dual_masks == masks; final slices are no-ops)
    y = pallas_encoder_stack(y, mask_f32, sp, heads)
    return y, masks_sub


# ----------------------------------------------------------------------------
if __name__ == "__main__":
    B, T, IDIM = 2, 16, 16
    ADIM, HEADS, UNITS, BLOCKS = 128, 4, 256, 2   # D=128 -> lane-dense activations

    key = jax.random.PRNGKey(0)
    xs = jax.random.normal(jax.random.fold_in(key, 1000), (B, T, IDIM), jnp.float32)
    masks = jnp.ones((B, 1, T), dtype=bool)

    raw = init_params(key, IDIM, ADIM, HEADS, UNITS, BLOCKS)
    packed = pack_params(raw)

    out_x, out_mask = encoder_forward(xs, masks, packed, ADIM, HEADS)
    out_x = jax.block_until_ready(out_x)
    out_mask = jax.block_until_ready(out_mask)

    assert out_x.shape == (B, 3, ADIM), out_x.shape
    assert out_mask.shape == (B, 1, 3), out_mask.shape
    assert bool(jnp.all(jnp.isfinite(out_x)))
    print("KERNEL_OK")
</pallas_src>

<mosaic_0001>
module attributes {stable_mosaic.version = 11 : i64} {
  func.func @_linear_kernel(%arg0: i32, %arg1: memref<104x9xf32, #tpu.memory_space<vmem>>, %arg2: memref<9x128xbf16, #tpu.memory_space<vmem>>, %arg3: memref<1x128xf32, #tpu.memory_space<vmem>>, %arg4: memref<104x128xf32, #tpu.memory_space<vmem>>) attributes {dimension_semantics = [#tpu.dimension_semantics<parallel>], iteration_bounds = array<i64: 1>, scalar_prefetch = 0 : i64, scratch_operands = 0 : i64, tpu.core_type = #tpu.core_type<tc>, window_params = [{transform_indices = @transform_0, window_bounds = array<i64: 104, 9>}, {pipeline_mode = #tpu.pipeline_mode<synchronous>, transform_indices = @transform_1, window_bounds = array<i64: 9, 128>}, {pipeline_mode = #tpu.pipeline_mode<synchronous>, transform_indices = @transform_2, window_bounds = array<i64: 1, 128>}, {transform_indices = @transform_3, window_bounds = array<i64: 104, 128>}]} {
    %c0 = arith.constant 0 : index
    %c0_0 = arith.constant 0 : index
    %0 = vector.load %arg1[%c0, %c0_0] : memref<104x9xf32, #tpu.memory_space<vmem>>, vector<104x9xf32>
    %1 = arith.truncf %0 : vector<104x9xf32> to vector<104x9xbf16>
    %c0_1 = arith.constant 0 : index
    %c0_2 = arith.constant 0 : index
    %2 = vector.load %arg2[%c0_1, %c0_2] : memref<9x128xbf16, #tpu.memory_space<vmem>>, vector<9x128xbf16>
    %cst = arith.constant dense<0.000000e+00> : vector<104x128xf32>
    %3 = tpu.matmul %1, %2, %cst {dimension_numbers = #tpu.dot_dimension_numbers<[1], [0], [0], [1], [0, 0, 1, 1], [], []>} : vector<104x9xbf16>, vector<9x128xbf16>, vector<104x128xf32> -> vector<104x128xf32>
    %c0_3 = arith.constant 0 : index
    %c0_4 = arith.constant 0 : index
    %4 = vector.load %arg3[%c0_3, %c0_4] : memref<1x128xf32, #tpu.memory_space<vmem>>, vector<1x128xf32>
    %5 = vector.broadcast %4 : vector<1x128xf32> to vector<104x128xf32>
    %6 = arith.addf %3, %5 : vector<104x128xf32>
    %cst_5 = arith.constant 0.000000e+00 : f32
    %7 = vector.broadcast %cst_5 : f32 to vector<104x128xf32>
    %8 = arith.maximumf %6, %7 : vector<104x128xf32>
    %c0_6 = arith.constant 0 : index
    %c0_7 = arith.constant 0 : index
    %9 = vector.load %arg4[%c0_6, %c0_7] : memref<104x128xf32, #tpu.memory_space<vmem>>, vector<104x128xf32>
    tpu.vector_store %arg4[%c0_6, %c0_7], %8 {strides = array<i32>} : memref<104x128xf32, #tpu.memory_space<vmem>>, vector<104x128xf32>,
    return
  }
  func.func @transform_0(%arg0: i32) -> (i32, i32) {
    %c0_i32 = arith.constant 0 : i32
    %c0_i32_0 = arith.constant 0 : i32
    return %arg0, %c0_i32 : i32, i32
  }
  func.func @transform_1(%arg0: i32) -> (i32, i32) {
    %c0_i32 = arith.constant 0 : i32
    %c0_i32_0 = arith.constant 0 : i32
    %c0_i32_1 = arith.constant 0 : i32
    return %c0_i32, %c0_i32_0 : i32, i32
  }
  func.func @transform_2(%arg0: i32) -> (i32, i32) {
    %c0_i32 = arith.constant 0 : i32
    %c0_i32_0 = arith.constant 0 : i32
    %c0_i32_1 = arith.constant 0 : i32
    return %c0_i32, %c0_i32_0 : i32, i32
  }
  func.func @transform_3(%arg0: i32) -> (i32, i32) {
    %c0_i32 = arith.constant 0 : i32
    %c0_i32_0 = arith.constant 0 : i32
    return %arg0, %c0_i32 : i32, i32
  }
}

</mosaic_0001>

<bundles_post_ra>
// kernel: tpu_custom_call.1
= control target key start
LH: loop header
LB: loop body
LE: loop exit
PB: predicated region body
PF: predicated region fallthrough
CT: control target
= control target key end

     0   :  { %vm69_vm0 = vcmask 1043456   ;;  %vm70_vm1 = vcmask 1044480   ;;  %v209_v5 = vmov 65535   ;;  %vm47_vm2 = vcmask 72704   ;;  %s291_s0 = inlined_call_operand.vmem [shape: f32[104,9], index: 0, kind: input, shape index: {}]   ;;  %s292_s1 = inlined_call_operand.vmem [shape: bf16[9,128], index: 1, kind: input, shape index: {}]   ;;  %s293_s2 = inlined_call_operand.vmem [shape: f32[1,128], index: 2, kind: input, shape index: {}]   ;;  %s294_s3 = inlined_call_operand.hbm [shape: f32[104,128], index: 3, kind: output, shape index: {}]  }
   0x1   :  { %v165_v0 = vld [vmem:[%s292_s1] sm:$0xf]  ;;  %v174_v1 = vld [vmem:[%s292_s1] sm:$0x10]  ;;  %v17_v4 = vld [vmem:[%s291_s0 + $0x8] sm:$0xff]  ;;  %v71_v6 = vsel %vm69_vm0, 4294967295, %v209_v5 }
   0x2   :  { %v166_v2 = vor.u32 %v174_v1, %v165_v0  ;;  %v16_v3 = vld [vmem:[%s291_s0] sm:$0xff]  ;;  %v21_v8 = vld [vmem:[%s291_s0 + $0x28] sm:$0xff]  ;;  %v26_v9 = vld [vmem:[%s291_s0 + $0x50] sm:$0xff]  ;;  %v72_v10 = vsel %vm70_vm1, %v71_v6, 0 }
   0x3   :  { %v20_v7 = vld [vmem:[%s291_s0 + $0x20] sm:$0xff]  ;;  %v27_v11 = vld [vmem:[%s291_s0 + $0x58] sm:$0xff]  ;;  %v25_v13 = vld [vmem:[%s291_s0 + $0x48] sm:$0xff]  ;;  %v29_v15 = vpack.c.bf16 %v17_v4, %v16_v3 }
   0x4   :  { %v24_v12 = vld [vmem:[%s291_s0 + $0x40] sm:$0xff]  ;;  %v74_v14 = vand.u32 %v166_v2, %v72_v10  ;;  %v31_v16 = vpack.c.bf16 %v21_v8, %v20_v7  ;;  %v34_v17 = vpack.c.bf16 %v27_v11, %v26_v9 }
   0x5   :  { %v33_v18 = vpack.c.bf16 %v25_v13, %v24_v12 }
   0x6   :  { %83 = vmatpush.bf16.msra.mxu0 %v74_v14  ;;  %175 = vmatpush.bf16.msra.mxu1 %v74_v14 }
   0x7   :  { %8 = vsyncpa [#allocation3], 0  ;;  %177 = vmatpush.bf16.msra.mxu3 %v74_v14  ;;  %176 = vmatpush.bf16.msra.mxu2 %v74_v14  ;;  %v18_v19 = vld [vmem:[%s291_s0 + $0x10] sm:$0xff]  ;;  %v19_v20 = vld [vmem:[%s291_s0 + $0x18] sm:$0xff]  ;;  %s151_s18 = sshll.u32 %s294_s3, 4  ;;  %s211_s19 = smov 128   ;;  %s152_s18 = int_to_ptr.hbm [resolvable:$true] %s151_s18 }
   0x8   :  { %v22_v21 = vld [vmem:[%s291_s0 + $0x30] sm:$0xff]  ;;  %v23_v22 = vld [vmem:[%s291_s0 + $0x38] sm:$0xff]  ;;  %v28_v23 = vld [vmem:[%s291_s0 + $0x60] sm:$0xff]  ;;  %v30_v24 = vpack.c.bf16 %v19_v20, %v18_v19  ;;  %s210_s0 = smov [#allocation2]   ;;  %s212_s20 = smov 8  }
   0x9   :  { %167 = vmatmul.msk.bf16.vlgmr.msra.gmra.mxu0 %vm47_vm2, %v29_v15  ;;  %169 = vmatmul.msk.bf16.vlgmr.msra.gmra.mxu1 %vm47_vm2, %v31_v16  ;;  %v32_v25 = vpack.c.bf16 %v23_v22, %v22_v21  ;;  %v35_v26 = vpack.c.bf16 %v28_v23, %v28_v23  ;;  %v182_v27 = vld [vmem:[%s293_s2] ss:$0 sm:$0xff]  ;;  %s149_s2 = sshll.u32 %s210_s0, 4  ;;  %s150_s2 = int_to_ptr.vmem [resolvable:$true] %s149_s2 }
   0xa   :  { %172 = vmatmul.msk.bf16.vlgmr.msra.gmra.mxu3 %vm47_vm2, %v34_v17  ;;  %171 = vmatmul.msk.bf16.vlgmr.msra.gmra.mxu2 %vm47_vm2, %v33_v18 }
  0x19   :  { %168 = vmatmul.msk.bf16.gmra.mxu0 %vm47_vm2, %v30_v24  ;;  %170 = vmatmul.msk.bf16.gmra.mxu1 %vm47_vm2, %v32_v25 }
  0x1a   :  { %173 = vmatmul.msk.bf16.gmra.mxu3 %vm47_vm2, %v35_v26 }
  0x86   :  { %v85_v28 = vpop.f32.mrf.mxu0  ;;  %v95_v29 = vpop.f32.mrf.mxu1 }
  0x87   :  { %v86_v30 = vadd.f32 %v182_v27, %v85_v28  ;;  %v96_v31 = vadd.f32 %v182_v27, %v95_v29 }
  0x89   :  { %v119_v32 = vmax.f32 %v86_v30, 0.0  ;;  %v123_v33 = vmax.f32 %v96_v31, 0.0 }
  0x8b   :  { %132 = vst [vmem:[#allocation2] sm:$0xff] %v119_v32 }
  0x8c   :  { %136 = vst [vmem:[#allocation2 + $0x20] sm:$0xff] %v123_v33 }
  0x8d   :  { %v110_v34 = vpop.f32.mrf.mxu3  ;;  %v105_v35 = vpop.f32.mrf.mxu2 }
  0x8e   :  { %v111_v36 = vadd.f32 %v182_v27, %v110_v34  ;;  %v87_v37 = vpop.f32.mrf.mxu0  ;;  %v97_v38 = vpop.f32.mrf.mxu1  ;;  %v106_v39 = vadd.f32 %v182_v27, %v105_v35 }
  0x8f   :  { %v88_v40 = vadd.f32 %v182_v27, %v87_v37  ;;  %v98_v41 = vadd.f32 %v182_v27, %v97_v38 }
  0x90   :  { %v129_v42 = vmax.f32 %v111_v36, 0.0  ;;  %v127_v45 = vmax.f32 %v106_v39, 0.0 }
  0x91   :  { %v120_v43 = vmax.f32 %v88_v40, 0.0  ;;  %v124_v44 = vmax.f32 %v98_v41, 0.0 }
  0x92   :  { %142 = vst [vmem:[#allocation2 + $0x50] sm:$0xff] %v129_v42 }
  0x93   :  { %133 = vst [vmem:[#allocation2 + $0x8] sm:$0xff] %v120_v43 }
  0x94   :  { %137 = vst [vmem:[#allocation2 + $0x28] sm:$0xff] %v124_v44 }
  0x95   :  { %140 = vst [vmem:[#allocation2 + $0x40] sm:$0xff] %v127_v45  ;;  %v112_v46 = vpop.f32.mrf.mxu3  ;;  %v107_v47 = vpop.f32.mrf.mxu2 }
  0x96   :  { %v113_v48 = vadd.f32 %v182_v27, %v112_v46  ;;  %v90_v49 = vpop.f32.mrf.mxu0  ;;  %v100_v50 = vpop.f32.mrf.mxu1  ;;  %v108_v51 = vadd.f32 %v182_v27, %v107_v47 }
  0x97   :  { %v91_v52 = vadd.f32 %v182_v27, %v90_v49  ;;  %v101_v53 = vadd.f32 %v182_v27, %v100_v50 }
  0x98   :  { %v130_v54 = vmax.f32 %v113_v48, 0.0  ;;  %v128_v57 = vmax.f32 %v108_v51, 0.0 }
  0x99   :  { %v121_v55 = vmax.f32 %v91_v52, 0.0  ;;  %v125_v56 = vmax.f32 %v101_v53, 0.0 }
  0x9a   :  { %143 = vst [vmem:[#allocation2 + $0x58] sm:$0xff] %v130_v54 }
  0x9b   :  { %134 = vst [vmem:[#allocation2 + $0x10] sm:$0xff] %v121_v55 }
  0x9c   :  { %138 = vst [vmem:[#allocation2 + $0x30] sm:$0xff] %v125_v56 }
  0x9d   :  { %141 = vst [vmem:[#allocation2 + $0x48] sm:$0xff] %v128_v57  ;;  %v115_v58 = vpop.f32.mrf.mxu3 }
  0x9e   :  { %v116_v59 = vadd.f32 %v182_v27, %v115_v58  ;;  %v92_v60 = vpop.f32.mrf.mxu0  ;;  %v102_v61 = vpop.f32.mrf.mxu1 }
  0x9f   :  { %v93_v62 = vadd.f32 %v182_v27, %v92_v60  ;;  %v103_v63 = vadd.f32 %v182_v27, %v102_v61 }
  0xa0   :  { %v131_v0 = vmax.f32 %v116_v59, 0.0 }
  0xa1   :  { %v122_v1 = vmax.f32 %v93_v62, 0.0  ;;  %v126_v2 = vmax.f32 %v103_v63, 0.0 }
  0xa2   :  { %144 = vst [vmem:[#allocation2 + $0x60] sm:$0xff] %v131_v0 }
  0xa3   :  { %135 = vst [vmem:[#allocation2 + $0x18] sm:$0xff] %v122_v1 }
  0xa4   :  { %139 = vst [vmem:[#allocation2 + $0x38] sm:$0xff] %v126_v2 }
  0xa5   :  { %v117_v3 = vpop.f32.mrf.mxu3  ;;  %157 = dma.vmem_to_hbm [thread:$0]  %s150_s2, 1664, %s152_s18, [#allocation3], %s211_s19, %s211_s19, %s212_s20  }
  0xa6   :  { %207 = dma.done.wait [#allocation3], 1664  }
  0xa7   :  { %208 = vsyncadd [#allocation3], 4294965632 }
  0xa8   :  { %162 = vsyncpa [#allocation3], 1 }

</bundles_post_ra>
